<compile_context>
chip_gen: v7x
topology: tpu7x:2x2x1
jax: 0.10.0
libtpu: 0.0.40
codegen_flags: <defaults>
</compile_context>

<pallas_src>
import math

import jax
import jax.numpy as jnp
from jax.experimental import pallas as pl
from jax.experimental.pallas import tpu as pltpu


_TARGET_BLOCK_BYTES = 4 * 1024 * 1024   # ~4 MiB blocks: near roofline on all gens
_VMEM_LIMIT_BYTES = 32 * 1024 * 1024    # 2x headroom over 4 buffers x 4 MiB
_MAX_LANE = 2048                        # lane-dense output (16 x 128)
_FALLBACK_BLOCK_LANES = 8192            # odd-size path block width


def _copy_kernel(x_ref, o_ref):
    # Pure data movement; the reshape itself has no arithmetic.
    o_ref[...] = x_ref[...]


def _pallas_copy_2d(arr, block_shape):
    """Identity copy of a 2-D array using lane/sublane-dense blocks."""
    rows, lanes = arr.shape
    br, bl = block_shape
    grid = (pl.cdiv(rows, br), pl.cdiv(lanes, bl))
    spec = pl.BlockSpec((br, bl), lambda i, j: (i, j))
    return pl.pallas_call(
        _copy_kernel,
        out_shape=jax.ShapeDtypeStruct(arr.shape, arr.dtype),
        grid_spec=pltpu.PrefetchScalarGridSpec(
            num_scalar_prefetch=0,
            grid=grid,
            in_specs=[spec],
            out_specs=spec,
        ),
        # NOTE: input_output_aliases={0: 0} would reuse the input HBM buffer,
        # but it only pays off when the caller actually donates `x`; when the
        # operand aliases a non-donated jit parameter XLA must insert an extra
        # copy to satisfy the alias, so we leave donation to the caller.
        compiler_params=pltpu.CompilerParams(
            dimension_semantics=("parallel", "parallel"),
            vmem_limit_bytes=_VMEM_LIMIT_BYTES,
        ),
    )(arr)


def reshape_forward(x, outer_shape, *, target_block_bytes=_TARGET_BLOCK_BYTES):
    """Pallas equivalent of Reshape(outer_shape)(x) == x.view(B, *outer_shape)."""
    b = x.shape[0]
    n = math.prod(x.shape[1:])
    if math.prod(outer_shape) != n:
        raise ValueError("outer_shape incompatible with input size")

    total = b * n
    ebytes = jnp.dtype(x.dtype).itemsize

    # Metadata-only flatten (free in XLA) so the kernel always sees a
    # batch-independent, lane/sublane-dense slab (never (B, 128) slivers).
    x_flat = x.reshape(total)

    if total % 128 == 0:
        # Lane width: largest multiple of 128 (capped at _MAX_LANE) dividing
        # `total`, so the 2-D view needs no padding and stores are unmasked.
        units = total // 128
        lane = 128
        for m in (_MAX_LANE // 128, 8, 4, 2, 1):
            if units % m == 0:
                lane = 128 * m
                break
        rows = total // lane
        # ~target_block_bytes per block; sublane count a multiple of 8, or the
        # full row extent (always a legal block dim).  Partial last block (if
        # rows % block_rows != 0) is masked by Pallas.
        block_rows = max(8, (target_block_bytes // (lane * ebytes)) // 8 * 8)
        block_rows = min(block_rows, rows)
        y2d = _pallas_copy_2d(x_flat.reshape(rows, lane), (block_rows, lane))
    else:
        # Odd total (not a multiple of 128): tile the lane axis of a
        # (1, total) view; the partial last block is masked by Pallas.  This
        # replaces the old single whole-array block (which could blow VMEM).
        block_lanes = min(total, _FALLBACK_BLOCK_LANES)
        y2d = _pallas_copy_2d(x_flat.reshape(1, total), (1, block_lanes))

    # Metadata-only: re-attach the requested outer shape (view semantics).
    return y2d.reshape((b,) + tuple(outer_shape))


def _run_case(key, shape, outer_shape, dtype=jnp.float32, **kw):
    x = jax.random.normal(key, shape, dtype=dtype)
    fwd = jax.jit(lambda t: reshape_forward(t, outer_shape, **kw))
    y = jax.block_until_ready(fwd(x))
    y_ref = x.reshape((shape[0],) + tuple(outer_shape))
    assert y.shape == y_ref.shape, (y.shape, y_ref.shape)
    assert y.dtype == x.dtype
    assert bool(jnp.array_equal(y, y_ref))


if __name__ == "__main__":
    key = jax.random.PRNGKey(0)
    k0, k1, k2 = jax.random.split(key, 3)

    # Main case (matches the VAE usage): (B, C, H, W) = (2, 4, 16, 16) -> (2, 8, 128).
    _run_case(k0, (2, 4, 16, 16), (8, 128))

    # Multi-block tiled path with a masked partial last block
    # (rows=12, block_rows=8 once target_block_bytes is shrunk).
    _run_case(k1, (2, 3, 64, 64), (3, 4096), target_block_bytes=64 * 1024)

    # Odd-size fallback path (total not a multiple of 128).
    _run_case(k2, (2, 5, 7, 3), (105,))

    print("KERNEL_OK")
</pallas_src>

<mosaic_0001>
module attributes {stable_mosaic.version = 11 : i64} {
  func.func @_copy_kernel(%arg0: i32, %arg1: i32, %arg2: memref<1x2048xf32, #tpu.memory_space<vmem>>, %arg3: memref<1x2048xf32, #tpu.memory_space<vmem>>) attributes {dimension_semantics = [#tpu.dimension_semantics<parallel>, #tpu.dimension_semantics<parallel>], iteration_bounds = array<i64: 1, 1>, scalar_prefetch = 0 : i64, scratch_operands = 0 : i64, tpu.core_type = #tpu.core_type<tc>, window_params = [{transform_indices = @transform_0, window_bounds = array<i64: 1, 2048>}, {transform_indices = @transform_1, window_bounds = array<i64: 1, 2048>}]} {
    %c0 = arith.constant 0 : index
    %c0_0 = arith.constant 0 : index
    %0 = vector.load %arg2[%c0, %c0_0] : memref<1x2048xf32, #tpu.memory_space<vmem>>, vector<1x2048xf32>
    %c0_1 = arith.constant 0 : index
    %c0_2 = arith.constant 0 : index
    %1 = vector.load %arg3[%c0_1, %c0_2] : memref<1x2048xf32, #tpu.memory_space<vmem>>, vector<1x2048xf32>
    tpu.vector_store %arg3[%c0_1, %c0_2], %0 {strides = array<i32>} : memref<1x2048xf32, #tpu.memory_space<vmem>>, vector<1x2048xf32>,
    return
  }
  func.func @transform_0(%arg0: i32, %arg1: i32) -> (i32, i32) {
    %c0_i32 = arith.constant 0 : i32
    return %arg0, %arg1 : i32, i32
  }
  func.func @transform_1(%arg0: i32, %arg1: i32) -> (i32, i32) {
    %c0_i32 = arith.constant 0 : i32
    return %arg0, %arg1 : i32, i32
  }
}

</mosaic_0001>

<bundles_post_ra>
// kernel: _lambda_.1
= control target key start
LH: loop header
LB: loop body
LE: loop exit
PB: predicated region body
PF: predicated region fallthrough
CT: control target
= control target key end

     0   :  { %s81_s0 = inlined_call_operand.vmem [shape: f32[1,2048], index: 0, kind: input, shape index: {}]   ;;  %s82_s1 = inlined_call_operand.hbm [shape: f32[1,2048], index: 1, kind: output, shape index: {}]  }
   0x1   :  { %v9_v0 = vld [vmem:[%s81_s0] sm:$0xff]  ;;  %v10_v1 = vld [vmem:[%s81_s0 + $0x8] sm:$0xff] }
   0x2   :  { %6 = vsyncpa [#allocation3], 0  ;;  %11 = vst [vmem:[#allocation2] sm:$0xff] %v9_v0  ;;  %s52_s10 = smov [#allocation2]  }
   0x3   :  { %12 = vst [vmem:[#allocation2 + $0x8] sm:$0xff] %v10_v1  ;;  %s19_s11 = sshll.u32 %s52_s10, 4  ;;  %s20_s11 = int_to_ptr.vmem [resolvable:$true] %s19_s11 }
   0x4   :  { %s28_s12 = scalar_lea.vmem %s20_s11, 256  ;;  %p33_p1 = scmp.lt.s32.totalorder %s20_s11, %s20_s11 }
   0x5   :  { %p29_p0 = scmp.ne.s32.totalorder %s20_s11, %s28_s12  ;;  %p34_p2 = scmp.lt.s32.totalorder %s28_s12, %s28_s12 }
   0x7   :  { %p35_p3 = por %p34_p2, %p33_p1 }
   0x9   :  { %p36_p4 = pnand %p35_p3, %p29_p0 }
   0xb   :  { %39 = shalt.err (!%p36_p4)
}
   0xc   :  { %s40_s15 = scalar_lea.hbm %s82_s1, 256 }
   0xd   :  { %p41_p5 = scmp.ne.s32.totalorder %s82_s1, %s40_s15  ;;  %p44_p6 = scmp.lt.u32.totalorder %s40_s15, %s82_s1 }
   0xf   :  { %p46_p7 = pnand %p44_p6, %p41_p5 }
  0x11   :  { %49 = shalt.err (!%p46_p7)
}
  0x12   :  { %22 = dma.vmem_to_hbm [thread:$0]  %s20_s11, 256, %s82_s1, [#allocation3]  }
  0x13   :  { %50 = dma.done.wait [#allocation3], 256  }
  0x14   :  { %51 = vsyncadd [#allocation3], 4294967040 }
  0x15   :  { %26 = vsyncpa [#allocation3], 1 }

</bundles_post_ra>
